<compile_context>
chip_gen: v7x
topology: tpu7x:2x2x1
jax: 0.10.0
libtpu: 0.0.40
codegen_flags: <defaults>
</compile_context>

<pallas_src>
import functools

import jax
import jax.numpy as jnp
from jax import lax
from jax.experimental import pallas as pl
from jax.experimental.pallas import tpu as pltpu

_BIG = 1e30          # sentinel "distance" for padded points (never wins a min)
_T1_MAX = 1024       # preds tile (lane axis), multiple of 128
_T2_MAX = 512        # gts tile (sublane axis), multiple of 8
_CHUNK_MAX = 32      # gts rows per MXU slab (keeps the slab inside the vregs)


def _round_up(x, m):
    return ((x + m - 1) // m) * m


def _pick_chunk(t2):
    for c in (_CHUNK_MAX, 16, 8):
        if t2 % c == 0:
            return c
    return 8


def _chamfer_kernel(xa_ref, ya_ref, out_ref, colmin_ref, rowmin_ref, acc_ref,
                    *, t1, t2, chunk, n1, n2):
    # xa_ref:     [1, T2, 8]    augmented gts rows
    # ya_ref:     [1, 8, T1]    augmented preds (lane-dense)
    # out_ref:    [1, 1, 1]
    # colmin_ref: [G1, 8, T1]   per-sublane running col minima (whole batch elem)
    # rowmin_ref: [T2, 128]     per-lane running row minima (current i2 stripe)
    # acc_ref:    [1, 1]        loss accumulator for the current batch element
    i2 = pl.program_id(1)
    j1 = pl.program_id(2)
    last_i2 = pl.num_programs(1) - 1
    last_j1 = pl.num_programs(2) - 1

    n_chunks = t2 // chunk
    n_lane_groups = t1 // 128
    n_sub_groups = chunk // 8

    @pl.when(jnp.logical_and(i2 == 0, j1 == 0))
    def _():
        acc_ref[...] = jnp.zeros_like(acc_ref)

    # New i2 stripe: reset the per-row (over preds) running minima.
    @pl.when(j1 == 0)
    def _():
        rowmin_ref[...] = jnp.full_like(rowmin_ref, _BIG)

    ya = ya_ref[0]                                        # [8, T1]

    # Stream the distance tile in `chunk`-row slabs; each slab
    #   P[i, j] = <xa_i, ya_j> = ||x_i||^2 + ||y_j||^2 - 2 <x_i, y_j>
    # is produced on the MXU and folded into partial minima right away.
    col_part = jnp.full((8, t1), _BIG, jnp.float32)       # per-sublane col mins
    for c in range(n_chunks):
        r0 = c * chunk
        xa_c = xa_ref[0, pl.ds(r0, chunk), :]             # [chunk, 8]
        p = lax.dot_general(xa_c, ya, (((1,), (0,)), ((), ())),
                            preferred_element_type=jnp.float32)  # [chunk, T1]

        # Column minima (over gts): fold sublane groups, keep 8-deep partials.
        cp = p[0:8, :]
        for g in range(1, n_sub_groups):
            cp = jnp.minimum(cp, p[g * 8:(g + 1) * 8, :])
        col_part = jnp.minimum(col_part, cp)

        # Row minima (over preds): fold lane groups, keep 128-wide partials.
        rp = p[:, 0:128]
        for g in range(1, n_lane_groups):
            rp = jnp.minimum(rp, p[:, g * 128:(g + 1) * 128])
        rowmin_ref[pl.ds(r0, chunk), :] = jnp.minimum(
            rowmin_ref[pl.ds(r0, chunk), :], rp)

    # Merge this step's per-sublane column minima into the per-slab buffer.
    @pl.when(i2 == 0)
    def _():
        colmin_ref[j1] = col_part

    @pl.when(i2 > 0)
    def _():
        colmin_ref[j1] = jnp.minimum(colmin_ref[j1], col_part)

    # loss2 contribution: rows of this i2 stripe are final at the last j1.
    @pl.when(j1 == last_j1)
    def _():
        row_min = jnp.min(rowmin_ref[...], axis=1, keepdims=True)     # [T2, 1]
        row_ids = i2 * t2 + lax.broadcasted_iota(jnp.int32, (t2, 1), 0)
        rsum = jnp.sum(jnp.where(row_ids < n2, row_min, 0.0),
                       axis=0, keepdims=True)                         # [1, 1]
        acc_ref[...] = acc_ref[...] + rsum * (0.5 / n2)

    # loss1 contribution: columns of this j1 slab are final at the last i2,
    # so the O(N1) reduction is distributed over the last stripe's steps.
    @pl.when(i2 == last_i2)
    def _():
        col_min = jnp.min(colmin_ref[j1], axis=0, keepdims=True)      # [1, T1]
        col_ids = j1 * t1 + lax.broadcasted_iota(jnp.int32, (1, t1), 1)
        csum = jnp.sum(jnp.where(col_ids < n1, col_min, 0.0),
                       axis=1, keepdims=True)                         # [1, 1]
        acc_ref[...] = acc_ref[...] + csum * (0.5 / n1)

    @pl.when(jnp.logical_and(i2 == last_i2, j1 == last_j1))
    def _():
        out_ref[...] = acc_ref[...][None].astype(out_ref.dtype)


def chamfer_distance(preds, gts):
    """preds: [B, N1, 3], gts: [B, N2, 3] -> [B] float32 chamfer loss."""
    B, N1, D = preds.shape
    B2, N2, D2 = gts.shape
    assert B == B2 and D == 3 and D2 == 3

    x = gts.astype(jnp.float32)    # [B, N2, 3]
    y = preds.astype(jnp.float32)  # [B, N1, 3]

    t1 = min(_T1_MAX, _round_up(N1, 128))
    t2 = min(_T2_MAX, _round_up(N2, 8))
    chunk = _pick_chunk(t2)
    n1p = _round_up(N1, t1)
    n2p = _round_up(N2, t2)
    g1 = n1p // t1
    g2 = n2p // t2

    rx = jnp.sum(x * x, axis=-1, keepdims=True)   # [B, N2, 1]
    ry = jnp.sum(y * y, axis=-1, keepdims=True)   # [B, N1, 1]

    # Augmented rows so one matmul yields squared distances (K padded to 8).
    xa = jnp.concatenate(
        [-2.0 * x, rx, jnp.ones((B, N2, 1), jnp.float32),
         jnp.zeros((B, N2, 3), jnp.float32)], axis=-1)            # [B, N2, 8]
    ya = jnp.concatenate(
        [y, jnp.ones((B, N1, 1), jnp.float32), ry,
         jnp.zeros((B, N1, 3), jnp.float32)], axis=-1)            # [B, N1, 8]

    # Pad point counts to tile multiples; padded points get a BIG sentinel in
    # the norm slot so they never win a min (and are masked out of the sums).
    if n2p > N2:
        pad = jnp.zeros((B, n2p - N2, 8), jnp.float32).at[:, :, 3].set(_BIG)
        xa = jnp.concatenate([xa, pad], axis=1)                   # [B, N2p, 8]
    if n1p > N1:
        pad = jnp.zeros((B, n1p - N1, 8), jnp.float32).at[:, :, 4].set(_BIG)
        ya = jnp.concatenate([ya, pad], axis=1)                   # [B, N1p, 8]

    ya_t = jnp.transpose(ya, (0, 2, 1))                           # [B, 8, N1p]

    kernel = functools.partial(_chamfer_kernel, t1=t1, t2=t2, chunk=chunk,
                               n1=N1, n2=N2)

    # Explicit VMEM budget (v5e scoped default is only 16 MiB): scratch +
    # double-buffered, lane-padded input/output blocks, with headroom, capped
    # below v7x's 64 MiB physical VMEM.
    scratch_bytes = (g1 * 8 * t1 + t2 * 128 + 8 * 128) * 4
    io_bytes = 2 * (t2 * 128 + 8 * t1 + 8 * 128) * 4
    vmem_limit = int(min(max(2 * (scratch_bytes + io_bytes) + (4 << 20),
                             16 << 20), 48 << 20))

    out = pl.pallas_call(
        kernel,
        out_shape=jax.ShapeDtypeStruct((B, 1, 1), jnp.float32),
        grid_spec=pltpu.PrefetchScalarGridSpec(
            num_scalar_prefetch=0,
            grid=(B, g2, g1),
            in_specs=[
                pl.BlockSpec((1, t2, 8), lambda b, i2, j1: (b, i2, 0)),   # xa
                pl.BlockSpec((1, 8, t1), lambda b, i2, j1: (b, 0, j1)),   # ya^T
            ],
            out_specs=pl.BlockSpec((1, 1, 1), lambda b, i2, j1: (b, 0, 0)),
            scratch_shapes=[
                pltpu.VMEM((g1, 8, t1), jnp.float32),   # per-sublane col mins
                pltpu.VMEM((t2, 128), jnp.float32),     # per-lane row mins
                pltpu.VMEM((1, 1), jnp.float32),        # loss accumulator
            ],
        ),
        compiler_params=pltpu.CompilerParams(
            dimension_semantics=("parallel", "arbitrary", "arbitrary"),
            vmem_limit_bytes=vmem_limit,
        ),
    )(xa, ya_t)
    return out.reshape(B)


def _chamfer_reference(preds, gts):
    # Pure-JAX reference mirroring the PyTorch module exactly.
    x = gts.astype(jnp.float32)    # [B, N2, 3]
    y = preds.astype(jnp.float32)  # [B, N1, 3]
    zz = jnp.einsum("bnd,bmd->bnm", x, y,
                    precision=lax.Precision.HIGHEST)      # [B, N2, N1]
    rx = jnp.sum(x * x, axis=-1)[:, :, None]              # [B, N2, 1]
    ry = jnp.sum(y * y, axis=-1)[:, None, :]              # [B, 1, N1]
    P = rx + ry - 2.0 * zz
    loss1 = jnp.mean(jnp.min(P, axis=1), axis=1)
    loss2 = jnp.mean(jnp.min(P, axis=2), axis=1)
    return (loss1 + loss2) / 2.0


if __name__ == "__main__":
    key = jax.random.PRNGKey(0)
    k1, k2, k3, k4 = jax.random.split(key, 4)

    # Small case (single tile per batch element, chunk=8 fallback path).
    B, N1, N2 = 2, 16, 24
    preds = jax.random.normal(k1, (B, N1, 3), dtype=jnp.float32)
    gts = jax.random.normal(k2, (B, N2, 3), dtype=jnp.float32)
    out = jax.block_until_ready(chamfer_distance(preds, gts))
    ref = _chamfer_reference(preds, gts)
    assert out.shape == (B,)
    assert jnp.allclose(out, ref, rtol=1e-4, atol=1e-4), (out, ref)

    # Larger case exercising streamed chunks, multi-tile accumulation on both
    # axes and padding (g2=2, g1=2, chunk=32, lane-group folds).
    Bb, N1b, N2b = 2, 1100, 513
    preds_b = jax.random.normal(k3, (Bb, N1b, 3), dtype=jnp.float32)
    gts_b = jax.random.normal(k4, (Bb, N2b, 3), dtype=jnp.float32)
    out_b = jax.block_until_ready(chamfer_distance(preds_b, gts_b))
    ref_b = _chamfer_reference(preds_b, gts_b)
    assert jnp.allclose(out_b, ref_b, rtol=1e-4, atol=1e-4), (out_b, ref_b)

    print("KERNEL_OK")
</pallas_src>

<mosaic_0001>
module attributes {stable_mosaic.version = 11 : i64} {
  func.func @_chamfer_kernel(%arg0: i32, %arg1: i32, %arg2: i32, %arg3: memref<1x24x8xf32, #tpu.memory_space<vmem>>, %arg4: memref<1x8x128xf32, #tpu.memory_space<vmem>>, %arg5: memref<1x1x1xf32, #tpu.memory_space<vmem>>, %arg6: memref<1x8x128xf32, #tpu.memory_space<vmem>>, %arg7: memref<24x128xf32, #tpu.memory_space<vmem>>, %arg8: memref<1x1xf32, #tpu.memory_space<vmem>>) attributes {dimension_semantics = [#tpu.dimension_semantics<parallel>, #tpu.dimension_semantics<arbitrary>, #tpu.dimension_semantics<arbitrary>], iteration_bounds = array<i64: 2, 1, 1>, scalar_prefetch = 0 : i64, scratch_operands = 3 : i64, tpu.core_type = #tpu.core_type<tc>, window_params = [{transform_indices = @transform_0, window_bounds = array<i64: 1, 24, 8>}, {transform_indices = @transform_1, window_bounds = array<i64: 1, 8, 128>}, {transform_indices = @transform_2, window_bounds = array<i64: 1, 1, 1>}]} {
    %c0_i32 = arith.constant 0 : i32
    %0 = arith.cmpi eq, %arg1, %c0_i32 : i32
    %c0_i32_0 = arith.constant 0 : i32
    %1 = arith.cmpi eq, %arg2, %c0_i32_0 : i32
    %2 = arith.andi %0, %1 : i1
    %3 = arith.extui %2 : i1 to i32
    %c0_i32_1 = arith.constant 0 : i32
    %4 = arith.cmpi ne, %3, %c0_i32_1 : i32
    scf.if %4 {
      %cst_39 = arith.constant 0.000000e+00 : f32
      %49 = vector.broadcast %cst_39 : f32 to vector<1x1xf32>
      %c0_40 = arith.constant 0 : index
      %c0_41 = arith.constant 0 : index
      %50 = vector.load %arg8[%c0_40, %c0_41] : memref<1x1xf32, #tpu.memory_space<vmem>>, vector<1x1xf32>
      tpu.vector_store %arg8[%c0_40, %c0_41], %49 {strides = array<i32>} : memref<1x1xf32, #tpu.memory_space<vmem>>, vector<1x1xf32>,
    } else {
    }
    %c0_i32_2 = arith.constant 0 : i32
    %5 = arith.cmpi eq, %arg2, %c0_i32_2 : i32
    %6 = arith.extui %5 : i1 to i32
    %c0_i32_3 = arith.constant 0 : i32
    %7 = arith.cmpi ne, %6, %c0_i32_3 : i32
    scf.if %7 {
      %cst_39 = arith.constant 1.000000e+30 : f32
      %49 = vector.broadcast %cst_39 : f32 to vector<24x128xf32>
      %c0_40 = arith.constant 0 : index
      %c0_41 = arith.constant 0 : index
      %50 = vector.load %arg7[%c0_40, %c0_41] : memref<24x128xf32, #tpu.memory_space<vmem>>, vector<24x128xf32>
      tpu.vector_store %arg7[%c0_40, %c0_41], %49 {strides = array<i32>} : memref<24x128xf32, #tpu.memory_space<vmem>>, vector<24x128xf32>,
    } else {
    }
    %c0 = arith.constant 0 : index
    %c0_4 = arith.constant 0 : index
    %c0_5 = arith.constant 0 : index
    %8 = vector.load %arg4[%c0, %c0_4, %c0_5] : memref<1x8x128xf32, #tpu.memory_space<vmem>>, vector<1x8x128xf32>
    %9 = vector.shape_cast %8 : vector<1x8x128xf32> to vector<8x128xf32>
    %cst = arith.constant 1.000000e+30 : f32
    %10 = vector.broadcast %cst : f32 to vector<8x128xf32>
    %c0_6 = arith.constant 0 : index
    %c0_7 = arith.constant 0 : index
    %c0_8 = arith.constant 0 : index
    %11 = vector.load %arg3[%c0_6, %c0_7, %c0_8] : memref<1x24x8xf32, #tpu.memory_space<vmem>>, vector<1x8x8xf32>
    %12 = vector.shape_cast %11 : vector<1x8x8xf32> to vector<8x8xf32>
    %cst_9 = arith.constant dense<0.000000e+00> : vector<8x128xf32>
    %13 = tpu.matmul %12, %9, %cst_9 {dimension_numbers = #tpu.dot_dimension_numbers<[1], [0], [0], [1], [0, 0, 1, 1], [], []>} : vector<8x8xf32>, vector<8x128xf32>, vector<8x128xf32> -> vector<8x128xf32>
    %14 = arith.minimumf %10, %13 : vector<8x128xf32>
    %c0_10 = arith.constant 0 : index
    %c0_11 = arith.constant 0 : index
    %15 = vector.load %arg7[%c0_10, %c0_11] : memref<24x128xf32, #tpu.memory_space<vmem>>, vector<8x128xf32>
    %16 = arith.minimumf %15, %13 : vector<8x128xf32>
    %c0_12 = arith.constant 0 : index
    %c0_13 = arith.constant 0 : index
    %17 = vector.load %arg7[%c0_12, %c0_13] : memref<24x128xf32, #tpu.memory_space<vmem>>, vector<8x128xf32>
    tpu.vector_store %arg7[%c0_12, %c0_13], %16 {strides = array<i32>} : memref<24x128xf32, #tpu.memory_space<vmem>>, vector<8x128xf32>,
    %c0_14 = arith.constant 0 : index
    %c8 = arith.constant 8 : index
    %c0_15 = arith.constant 0 : index
    %18 = vector.load %arg3[%c0_14, %c8, %c0_15] : memref<1x24x8xf32, #tpu.memory_space<vmem>>, vector<1x8x8xf32>
    %19 = vector.shape_cast %18 : vector<1x8x8xf32> to vector<8x8xf32>
    %cst_16 = arith.constant dense<0.000000e+00> : vector<8x128xf32>
    %20 = tpu.matmul %19, %9, %cst_16 {dimension_numbers = #tpu.dot_dimension_numbers<[1], [0], [0], [1], [0, 0, 1, 1], [], []>} : vector<8x8xf32>, vector<8x128xf32>, vector<8x128xf32> -> vector<8x128xf32>
    %21 = arith.minimumf %14, %20 : vector<8x128xf32>
    %c8_17 = arith.constant 8 : index
    %c0_18 = arith.constant 0 : index
    %22 = vector.load %arg7[%c8_17, %c0_18] : memref<24x128xf32, #tpu.memory_space<vmem>>, vector<8x128xf32>
    %23 = arith.minimumf %22, %20 : vector<8x128xf32>
    %c8_19 = arith.constant 8 : index
    %c0_20 = arith.constant 0 : index
    %24 = vector.load %arg7[%c8_19, %c0_20] : memref<24x128xf32, #tpu.memory_space<vmem>>, vector<8x128xf32>
    tpu.vector_store %arg7[%c8_19, %c0_20], %23 {strides = array<i32>} : memref<24x128xf32, #tpu.memory_space<vmem>>, vector<8x128xf32>,
    %c0_21 = arith.constant 0 : index
    %c16 = arith.constant 16 : index
    %c0_22 = arith.constant 0 : index
    %25 = vector.load %arg3[%c0_21, %c16, %c0_22] : memref<1x24x8xf32, #tpu.memory_space<vmem>>, vector<1x8x8xf32>
    %26 = vector.shape_cast %25 : vector<1x8x8xf32> to vector<8x8xf32>
    %cst_23 = arith.constant dense<0.000000e+00> : vector<8x128xf32>
    %27 = tpu.matmul %26, %9, %cst_23 {dimension_numbers = #tpu.dot_dimension_numbers<[1], [0], [0], [1], [0, 0, 1, 1], [], []>} : vector<8x8xf32>, vector<8x128xf32>, vector<8x128xf32> -> vector<8x128xf32>
    %28 = arith.minimumf %21, %27 : vector<8x128xf32>
    %c16_24 = arith.constant 16 : index
    %c0_25 = arith.constant 0 : index
    %29 = vector.load %arg7[%c16_24, %c0_25] : memref<24x128xf32, #tpu.memory_space<vmem>>, vector<8x128xf32>
    %30 = arith.minimumf %29, %27 : vector<8x128xf32>
    %c16_26 = arith.constant 16 : index
    %c0_27 = arith.constant 0 : index
    %31 = vector.load %arg7[%c16_26, %c0_27] : memref<24x128xf32, #tpu.memory_space<vmem>>, vector<8x128xf32>
    tpu.vector_store %arg7[%c16_26, %c0_27], %30 {strides = array<i32>} : memref<24x128xf32, #tpu.memory_space<vmem>>, vector<8x128xf32>,
    %c0_i32_28 = arith.constant 0 : i32
    %32 = arith.cmpi eq, %arg1, %c0_i32_28 : i32
    %33 = arith.extui %32 : i1 to i32
    %c0_i32_29 = arith.constant 0 : i32
    %34 = arith.cmpi ne, %33, %c0_i32_29 : i32
    scf.if %34 {
      %49 = arith.index_cast %arg2 : i32 to index
      %c0_39 = arith.constant 0 : index
      %c0_40 = arith.constant 0 : index
      %50 = vector.load %arg6[%49, %c0_39, %c0_40] : memref<1x8x128xf32, #tpu.memory_space<vmem>>, vector<1x8x128xf32>
      %51 = vector.shape_cast %50 : vector<1x8x128xf32> to vector<8x128xf32>
      %52 = vector.shape_cast %28 : vector<8x128xf32> to vector<1x8x128xf32>
      tpu.vector_store %arg6[%49, %c0_39, %c0_40], %52 {strides = array<i32>} : memref<1x8x128xf32, #tpu.memory_space<vmem>>, vector<1x8x128xf32>,
    } else {
    }
    %c0_i32_30 = arith.constant 0 : i32
    %35 = arith.cmpi sgt, %arg1, %c0_i32_30 : i32
    %36 = arith.extui %35 : i1 to i32
    %c0_i32_31 = arith.constant 0 : i32
    %37 = arith.cmpi ne, %36, %c0_i32_31 : i32
    scf.if %37 {
      %49 = arith.index_cast %arg2 : i32 to index
      %c0_39 = arith.constant 0 : index
      %c0_40 = arith.constant 0 : index
      %50 = vector.load %arg6[%49, %c0_39, %c0_40] : memref<1x8x128xf32, #tpu.memory_space<vmem>>, vector<1x8x128xf32>
      %51 = vector.shape_cast %50 : vector<1x8x128xf32> to vector<8x128xf32>
      %52 = arith.minimumf %51, %28 : vector<8x128xf32>
      %53 = arith.index_cast %arg2 : i32 to index
      %c0_41 = arith.constant 0 : index
      %c0_42 = arith.constant 0 : index
      %54 = vector.load %arg6[%53, %c0_41, %c0_42] : memref<1x8x128xf32, #tpu.memory_space<vmem>>, vector<1x8x128xf32>
      %55 = vector.shape_cast %54 : vector<1x8x128xf32> to vector<8x128xf32>
      %56 = vector.shape_cast %52 : vector<8x128xf32> to vector<1x8x128xf32>
      tpu.vector_store %arg6[%53, %c0_41, %c0_42], %56 {strides = array<i32>} : memref<1x8x128xf32, #tpu.memory_space<vmem>>, vector<1x8x128xf32>,
    } else {
    }
    %c0_i32_32 = arith.constant 0 : i32
    %38 = arith.cmpi eq, %arg2, %c0_i32_32 : i32
    %39 = arith.extui %38 : i1 to i32
    %c0_i32_33 = arith.constant 0 : i32
    %40 = arith.cmpi ne, %39, %c0_i32_33 : i32
    scf.if %40 {
      %c0_39 = arith.constant 0 : index
      %c0_40 = arith.constant 0 : index
      %49 = vector.load %arg7[%c0_39, %c0_40] : memref<24x128xf32, #tpu.memory_space<vmem>>, vector<24x128xf32>
      %cst_41 = arith.constant dense<0x7F800000> : vector<24xf32>
      %50 = vector.multi_reduction <minimumf>, %49, %cst_41 [1] : vector<24x128xf32> to vector<24xf32>
      %51 = vector.shape_cast %50 : vector<24xf32> to vector<24x1xf32>
      %c24_i32 = arith.constant 24 : i32
      %52 = arith.muli %arg1, %c24_i32 : i32
      %53 = tpu.iota {dimensions = array<i32: 0>} : vector<24x1xi32>
      %54 = vector.broadcast %52 : i32 to vector<24x1xi32>
      %55 = arith.addi %54, %53 : vector<24x1xi32>
      %c24_i32_42 = arith.constant 24 : i32
      %56 = vector.broadcast %c24_i32_42 : i32 to vector<24x1xi32>
      %57 = arith.cmpi slt, %55, %56 : vector<24x1xi32>
      %cst_43 = arith.constant 0.000000e+00 : f32
      %58 = vector.broadcast %cst_43 : f32 to vector<24x1xf32>
      %59 = arith.select %57, %51, %58 : vector<24x1xi1>, vector<24x1xf32>
      %cst_44 = arith.constant dense<0.000000e+00> : vector<1xf32>
      %60 = vector.multi_reduction <add>, %59, %cst_44 [0] : vector<24x1xf32> to vector<1xf32>
      %61 = vector.shape_cast %60 : vector<1xf32> to vector<1x1xf32>
      %c0_45 = arith.constant 0 : index
      %c0_46 = arith.constant 0 : index
      %62 = vector.load %arg8[%c0_45, %c0_46] : memref<1x1xf32, #tpu.memory_space<vmem>>, vector<1x1xf32>
      %cst_47 = arith.constant 0.020833334 : f32
      %63 = vector.broadcast %cst_47 : f32 to vector<1x1xf32>
      %64 = arith.mulf %61, %63 : vector<1x1xf32>
      %65 = arith.addf %62, %64 : vector<1x1xf32>
      %c0_48 = arith.constant 0 : index
      %c0_49 = arith.constant 0 : index
      %66 = vector.load %arg8[%c0_48, %c0_49] : memref<1x1xf32, #tpu.memory_space<vmem>>, vector<1x1xf32>
      tpu.vector_store %arg8[%c0_48, %c0_49], %65 {strides = array<i32>} : memref<1x1xf32, #tpu.memory_space<vmem>>, vector<1x1xf32>,
    } else {
    }
    %c0_i32_34 = arith.constant 0 : i32
    %41 = arith.cmpi eq, %arg1, %c0_i32_34 : i32
    %42 = arith.extui %41 : i1 to i32
    %c0_i32_35 = arith.constant 0 : i32
    %43 = arith.cmpi ne, %42, %c0_i32_35 : i32
    scf.if %43 {
      %49 = arith.index_cast %arg2 : i32 to index
      %c0_39 = arith.constant 0 : index
      %c0_40 = arith.constant 0 : index
      %50 = vector.load %arg6[%49, %c0_39, %c0_40] : memref<1x8x128xf32, #tpu.memory_space<vmem>>, vector<1x8x128xf32>
      %51 = vector.shape_cast %50 : vector<1x8x128xf32> to vector<8x128xf32>
      %cst_41 = arith.constant dense<0x7F800000> : vector<128xf32>
      %52 = vector.multi_reduction <minimumf>, %51, %cst_41 [0] : vector<8x128xf32> to vector<128xf32>
      %53 = vector.shape_cast %52 : vector<128xf32> to vector<1x128xf32>
      %c128_i32 = arith.constant 128 : i32
      %54 = arith.muli %arg2, %c128_i32 : i32
      %55 = tpu.iota {dimensions = array<i32: 1>} : vector<1x128xi32>
      %56 = vector.broadcast %54 : i32 to vector<1x128xi32>
      %57 = arith.addi %56, %55 : vector<1x128xi32>
      %c16_i32 = arith.constant 16 : i32
      %58 = vector.broadcast %c16_i32 : i32 to vector<1x128xi32>
      %59 = arith.cmpi slt, %57, %58 : vector<1x128xi32>
      %cst_42 = arith.constant 0.000000e+00 : f32
      %60 = vector.broadcast %cst_42 : f32 to vector<1x128xf32>
      %61 = arith.select %59, %53, %60 : vector<1x128xi1>, vector<1x128xf32>
      %cst_43 = arith.constant dense<0.000000e+00> : vector<1xf32>
      %62 = vector.multi_reduction <add>, %61, %cst_43 [1] : vector<1x128xf32> to vector<1xf32>
      %63 = vector.shape_cast %62 : vector<1xf32> to vector<1x1xf32>
      %c0_44 = arith.constant 0 : index
      %c0_45 = arith.constant 0 : index
      %64 = vector.load %arg8[%c0_44, %c0_45] : memref<1x1xf32, #tpu.memory_space<vmem>>, vector<1x1xf32>
      %cst_46 = arith.constant 3.125000e-02 : f32
      %65 = vector.broadcast %cst_46 : f32 to vector<1x1xf32>
      %66 = arith.mulf %63, %65 : vector<1x1xf32>
      %67 = arith.addf %64, %66 : vector<1x1xf32>
      %c0_47 = arith.constant 0 : index
      %c0_48 = arith.constant 0 : index
      %68 = vector.load %arg8[%c0_47, %c0_48] : memref<1x1xf32, #tpu.memory_space<vmem>>, vector<1x1xf32>
      tpu.vector_store %arg8[%c0_47, %c0_48], %67 {strides = array<i32>} : memref<1x1xf32, #tpu.memory_space<vmem>>, vector<1x1xf32>,
    } else {
    }
    %c0_i32_36 = arith.constant 0 : i32
    %44 = arith.cmpi eq, %arg1, %c0_i32_36 : i32
    %c0_i32_37 = arith.constant 0 : i32
    %45 = arith.cmpi eq, %arg2, %c0_i32_37 : i32
    %46 = arith.andi %44, %45 : i1
    %47 = arith.extui %46 : i1 to i32
    %c0_i32_38 = arith.constant 0 : i32
    %48 = arith.cmpi ne, %47, %c0_i32_38 : i32
    scf.if %48 {
      %c0_39 = arith.constant 0 : index
      %c0_40 = arith.constant 0 : index
      %49 = vector.load %arg8[%c0_39, %c0_40] : memref<1x1xf32, #tpu.memory_space<vmem>>, vector<1x1xf32>
      %50 = vector.shape_cast %49 : vector<1x1xf32> to vector<1x1x1xf32>
      %c0_41 = arith.constant 0 : index
      %c0_42 = arith.constant 0 : index
      %c0_43 = arith.constant 0 : index
      %51 = vector.load %arg5[%c0_41, %c0_42, %c0_43] : memref<1x1x1xf32, #tpu.memory_space<vmem>>, vector<1x1x1xf32>
      tpu.vector_store %arg5[%c0_41, %c0_42, %c0_43], %50 {strides = array<i32>} : memref<1x1x1xf32, #tpu.memory_space<vmem>>, vector<1x1x1xf32>,
    } else {
    }
    return
  }
  func.func @transform_0(%arg0: i32, %arg1: i32, %arg2: i32) -> (i32, i32, i32) {
    %c0_i32 = arith.constant 0 : i32
    %c0_i32_0 = arith.constant 0 : i32
    return %arg0, %arg1, %c0_i32 : i32, i32, i32
  }
  func.func @transform_1(%arg0: i32, %arg1: i32, %arg2: i32) -> (i32, i32, i32) {
    %c0_i32 = arith.constant 0 : i32
    %c0_i32_0 = arith.constant 0 : i32
    return %arg0, %c0_i32, %arg2 : i32, i32, i32
  }
  func.func @transform_2(%arg0: i32, %arg1: i32, %arg2: i32) -> (i32, i32, i32) {
    %c0_i32 = arith.constant 0 : i32
    %c0_i32_0 = arith.constant 0 : i32
    %c0_i32_1 = arith.constant 0 : i32
    return %arg0, %c0_i32, %c0_i32_0 : i32, i32, i32
  }
}

</mosaic_0001>

<bundles_post_ra>
// kernel: tpu_custom_call.1
= control target key start
LH: loop header
LB: loop body
LE: loop exit
PB: predicated region body
PF: predicated region fallthrough
CT: control target
= control target key end

     0   :  { %s725_s9 = smov 0   ;;  %s727_s10 = smov 0   ;;  %s773_s0 = inlined_call_operand.vmem [shape: f32[2,24,8], index: 0, kind: input, shape index: {}]   ;;  %s774_s1 = inlined_call_operand.vmem [shape: f32[2,8,128], index: 1, kind: input, shape index: {}]   ;;  %s775_s2 = inlined_call_operand.vmem [shape: f32[2,1,1], index: 2, kind: output, shape index: {}]  }
   0x1   :  { %s729_s11 = smov 0  }
   0x2 LB: > { %s31_s12 = sadd.s32 1, %s702_s10  ;;  %p628_p0 = scmp.ge.s32.totalorder %s706_s11, 1  ;;  %s706_s11 = sphi %s729_s11, %s12_s11   ;;  %s702_s10 = sphi %s727_s10, %s777_s10   ;;  %s698_s9 = sphi %s725_s9, %s776_s9  }
   0x3   : > { %p33_p1 = scmp.ge.s32.totalorder %s31_s12, 2  ;;  %p152_p2 = scmp.lt.s32.totalorder %s706_s11, 3 }
   0x5   : > { %s779_s12 = smov (%p33_p1, %s31_s12), 0  ;;  %p153_p3 = pnand %p628_p0, %p152_p2 }
   0x6   : > { %p184_p4 = scmp.lt.s32.totalorder (!%p153_p3), %s698_s9, 1  ;;  %v708_v0 = vmov (!%p153_p3), 0.0   ;;  %vm709_vm0 = vmmov (!%p153_p3), 0   ;;  %vm219_vm1 = vcmask (!%p153_p3), 64512   ;;  %v521_v17 = vlaneseq (!%p153_p3) }
   0x7   : > { %156 = sbr.rel (%p153_p3) target bundleno = 418 (0x1a2), region = 28  ;;  %642 = vmatprep.subr.mxu0 (!%p153_p3), %v708_v0  ;;  %644 = vmatprep.mubr.msk.f32.mxu0 (!%p153_p3), %vm709_vm0, %v708_v0  ;;  %vm209_vm3 = vcmask (!%p153_p3), 0  }
   0x8   : > { %647 = vmatprep.subr.mxu1 (!%p153_p3), %v708_v0  ;;  %649 = vmatprep.mubr.msk.f32.mxu1 (!%p153_p3), %vm709_vm0, %v708_v0  ;;  %v522_v20 = vand.u32 (!%p153_p3), 127, %v521_v17  ;;  %210 = vst.msk [vmem:[#allocation4] sm:$0x1] (!%p153_p3), %vm209_vm3, %v708_v0 }
   0xa   : > { %vm525_vm2 = vcmp.lt.s32.totalorder (!%p153_p3), %v522_v20, 16 }
   0xe   : > { %s781_s9 = smov (!%p184_p4, %s698_s9), 1 }
   0xf   : > { %s630_s13 = sshll.u32 %s781_s9, 3  ;;  %s657_s17 = smul.u32 24, %s781_s9  ;;  %v503_v36 = vld [vmem:[#allocation4] sm:$0x1] }
  0x10   : > { %s199_s16 = scalar_lea.vmem %s774_s1, %s630_s13  ;;  %s202_s23 = scalar_lea.vmem %s775_s2, %s781_s9 }
  0x11   : > { %v217_v1 = vld [vmem:[%s199_s16] sm:$0xff]  ;;  %s191_s20 = scalar_lea.vmem %s773_s0, %s657_s17 }
  0x12   : > { %643 = vmatpush3.msra.mxu0 %v217_v1  ;;  %648 = vmatpush3.msra.mxu1 %v217_v1  ;;  %v218_v2 = vld [vmem:[%s191_s20] sm:$0xff]  ;;  %v297_v3 = vld [vmem:[%s191_s20 + $0x8] sm:$0xff]  ;;  %v375_v4 = vld [vmem:[%s191_s20 + $0x10] sm:$0xff] }
  0x13   : > { %652 = vmatprep.subr.mxu0 %v708_v0  ;;  %645 = vmatmul.mubr.msk.f32.vlgmr.msra.gmra.mrb[0].mxu0 %vm219_vm1, %v218_v2 }
  0x14   : > { %650 = vmatmul.mubr.msk.f32.vlgmr.msra.gmra.mrb[0].mxu1 %vm219_vm1, %v297_v3  ;;  %653 = vmatpush3.msra.mxu0 %v217_v1 }
  0x15   : > { %654 = vmatprep.mubr.msk.f32.mxu0 %vm709_vm0, %v708_v0 }
  0x17   : > { %655 = vmatmul.mubr.msk.f32.vlgmr.msra.gmra.mrb[2].mxu0 %vm219_vm1, %v375_v4 }
  0xe6   : > { %v289_v5 = vpop.f32.mrb[0].mxu0 }
  0xe7   : > { %v367_v6 = vpop.f32.mrb[0].mxu1  ;;  %v293_v7 = vmin.f32 %v289_v5, 1e+30  ;;  %v646_v8 = vpop.f32.mrb[1].mxu0 }
  0xe8   : > { %v651_v9 = vpop.f32.mrb[1].mxu1  ;;  %v373_v11 = vmin.f32 %v367_v6, 1e+30 }
  0xe9   : > { %v371_v10 = vmin.f32 %v293_v7, %v367_v6  ;;  %474 = vmin.xlane.f32.xlu0 %v293_v7 }
  0xea   : > { %v445_v12 = vpop.f32.mrb[2].mxu0 }
  0xeb   : > { %v449_v13 = vmin.f32 %v371_v10, %v445_v12  ;;  %v656_v14 = vpop.f32.mrb[3].mxu0  ;;  %v451_v15 = vmin.f32 %v445_v12, 1e+30 }
  0xed   : > { %v514_v16 = vrot.slane %v449_v13, 4  ;;  %476 = vmin.xlane.f32.xlu0 %v373_v11  ;;  %478 = vmin.xlane.f32.xlu1 %v451_v15 }
  0xef   : > { %v515_v18 = vmin.f32 %v449_v13, %v514_v16 }
  0xf1   : > { %v516_v19 = vrot.slane %v515_v18, 2 }
  0xf3   : > { %v517_v21 = vmin.f32 %v515_v18, %v516_v19 }
  0xf5   : > { %v518_v22 = vrot.slane %v517_v21, 1 }
  0xf7   : > { %v519_v23 = vmin.f32 %v517_v21, %v518_v22 }
  0xf9   : > { %v526_v24 = vsel %vm525_vm2, %v519_v23, 0.0 }
  0xfa   : > { %527 = vadd.xlane.f32.xlu1 %v526_v24 }
 0x176   : > { %v475_v25 = vpop.xlane.xlu0 %474 }
 0x17a   : > { %v477_v26 = vpop.xlane.xlu0 %476  ;;  %v479_v27 = vpop.xlane.xlu1 %478 }
 0x17b   : > { %v495_v28 = vadd.f32 %v477_v26, %v475_v25 }
 0x17d   : > { %v496_v29 = vadd.f32 %v495_v28, %v479_v27 }
 0x17f   : > { %v497_v30 = vrot.slane %v496_v29, 4 }
 0x181   : > { %v498_v31 = vadd.f32 %v497_v30, %v496_v29 }
 0x183   : > { %v499_v32 = vrot.slane %v498_v31, 2 }
 0x185   : > { %v500_v33 = vadd.f32 %v499_v32, %v498_v31 }
 0x187   : > { %v501_v34 = vrot.slane %v500_v33, 1  ;;  %v528_v39 = vpop.xlane.xlu1 %527 }
 0x188   : > { %v530_v40 = vmul.f32 0.03125, %v528_v39 }
 0x189   : > { %v502_v35 = vadd.f32 %v501_v34, %v500_v33 }
 0x18b   : > { %v504_v37 = vmul.f32 0.020833334, %v502_v35 }
 0x18d   : > { %v505_v38 = vadd.f32 %v504_v37, %v503_v36 }
 0x18f   : > { %507 = vst.msk [vmem:[#allocation4] sm:$0x1] %vm209_vm3, %v505_v38 }
 0x196   : > { %v529_v41 = vld [vmem:[#allocation4] sm:$0x1] }
 0x197   : > { %v531_v42 = vadd.f32 %v530_v40, %v529_v41 }
 0x199   : > { %533 = vst.msk [vmem:[#allocation4] sm:$0x1] %vm209_vm3, %v531_v42 }
 0x1a0   : > { %v536_v43 = vld [vmem:[#allocation4] sm:$0x1] }
 0x1a1   : > { %538 = vst.msk [vmem:[%s202_s23] sm:$0x1] %vm209_vm3, %v536_v43 }
 0x1a2 PF: > { %s12_s11 = sadd.s32 1, %s706_s11   ;;  %s776_s9 = smov %s702_s10 }
 0x1a3   : > { %p9_p5 = scmp.ge.s32.totalorder %s12_s11, 4   ;;  %s777_s10 = smov %s779_s12 }
 0x1a5   :  { %11 = sbr.rel (!%p9_p5) target bundleno = 2 (0x2), region = 92 }

</bundles_post_ra>
